<compile_context>
chip_gen: v6e
topology: v6e:2x2x1
jax: 0.10.0
libtpu: 0.0.40
codegen_flags: <defaults>
</compile_context>

<pallas_src>
import functools
from typing import NamedTuple

import jax
import jax.numpy as jnp
from jax.experimental import pallas as pl
from jax.experimental.pallas import tpu as pltpu


def _round_up(x: int, m: int) -> int:
    return (x + m - 1) // m * m


def _vmem_capacity_bytes() -> int:
    try:
        info = pltpu.get_tpu_info()
        cap = getattr(info, "vmem_capacity_bytes", None)
        if cap:
            return int(cap)
    except Exception:
        pass
    return 128 << 20  # conservative fallback (v5e/v6e class)


def _vmem_footprint(tm, th, Cp, in_isz, w_isz, out_isz, use_scratch) -> int:
    """Approximate VMEM bytes for one grid step with double-buffered streams."""
    x_b = 2 * tm * Cp * in_isz                      # x tile, double-buffered
    w_b = 2 * Cp * (2 * th) * w_isz                 # fused gate|up weight tile
    w_b += 2 * th * Cp * w_isz                      # down weight tile
    o_b = 2 * tm * Cp * out_isz                     # output tile
    a_b = tm * Cp * 4 if use_scratch else 0         # f32 accumulator scratch
    t_b = tm * (2 * th) * 4 + tm * th * 4           # gu + hidden f32 intermediates
    return x_b + w_b + o_b + a_b + t_b


def choose_tiles(M: int, C: int, H: int, dtype=jnp.float32):
    """Generation-aware (tm, th) defaults driven by VMEM capacity & roofline."""
    isz = jnp.dtype(dtype).itemsize
    Cp = _round_up(C, 128)
    Hp = _round_up(H, 128)
    sub = max(8, 32 // isz)                 # sublane packing: 8 f32 / 16 bf16 / 32 int8
    cap = _vmem_capacity_bytes()
    budget = int(cap * 0.70)                # leave headroom for Mosaic internal scratch
    if cap <= (80 << 20):
        # v7x-class (64 MiB/TC): roofline ~310 flop/byte -> tm=512 clears it.
        cands = [(512, 512), (512, 256), (256, 256), (256, 128), (128, 128)]
    else:
        # v5e/v6e (128 MiB): v6e wants tm~1024 (bf16) for ~650 flop/byte;
        # oversizing on v5e only costs VMEM, which is plentiful there.
        cands = [(1024, 512), (768, 512), (512, 512), (256, 512),
                 (256, 256), (128, 128)]
    tm, th = 128, 128
    for cm, ch in cands:
        tm_eff = max(sub, min(cm, _round_up(M, sub)))
        th_eff = max(128, min(ch, Hp))
        if _vmem_footprint(tm_eff, th_eff, Cp, isz, isz, isz,
                           use_scratch=(jnp.dtype(dtype) != jnp.float32)) <= budget:
            tm, th = tm_eff, th_eff
            break
    # Decode-shaped inputs: single M tile -> make sure the H pipeline has
    # several steps so weight DMAs overlap with compute.
    if _round_up(M, tm) == tm:
        while th > 128 and (Hp + th - 1) // th < 4:
            th //= 2
        th = max(128, _round_up(th, 128))
    return tm, th


class SwiGLUWeights(NamedTuple):
    wgu: jax.Array   # (Cp, 2*Hp): per-H-tile interleaved [gate_tile | up_tile]
    wd: jax.Array    # (Hp, Cp)
    C: int
    H: int
    Cp: int
    Hp: int
    th: int


def swiglu_prepare(w_gate, w_up, w_down, *, th=512) -> SwiGLUWeights:
    """One-time weight prep: pad to 128-aligned shapes and interleave gate/up
    per H-tile so the kernel streams a single fused (Cp, 2*th) weight block.

    w_gate/w_up: (C, H); w_down: (H, C)  ([in, out] layout, transposed vs torch).
    """
    C, H = w_gate.shape
    Cp = _round_up(C, 128)
    Hp = _round_up(H, 128)
    th = max(128, _round_up(th, 128))
    th = min(th, Hp)
    Hp = _round_up(Hp, th)

    wg = jnp.pad(w_gate, ((0, Cp - C), (0, Hp - H))) if (Cp, Hp) != (C, H) else w_gate
    wu = jnp.pad(w_up, ((0, Cp - C), (0, Hp - H))) if (Cp, Hp) != (C, H) else w_up
    wd = jnp.pad(w_down, ((0, Hp - H), (0, Cp - C))) if (Hp, Cp) != (H, C) else w_down

    n_h = Hp // th
    # (Cp, n_h, 2*th): [gate H-tile h | up H-tile h] contiguous per block index h.
    wgu = jnp.concatenate(
        [wg.reshape(Cp, n_h, th), wu.reshape(Cp, n_h, th)], axis=-1
    ).reshape(Cp, 2 * Hp)
    return SwiGLUWeights(wgu=wgu, wd=wd, C=C, H=H, Cp=Cp, Hp=Hp, th=th)


# ----------------------------- kernels ---------------------------------------

def _swiglu_kernel_f32out(x_ref, wgu_ref, wd_ref, o_ref, *, th):
    # f32 output: accumulate directly into the h-invariant resident output tile.
    h = pl.program_id(1)

    @pl.when(h == 0)
    def _init():
        o_ref[...] = jnp.zeros_like(o_ref)

    x = x_ref[...]
    gu = jnp.dot(x, wgu_ref[...], preferred_element_type=jnp.float32)
    gate = gu[:, :th]
    up = gu[:, th:]
    hidden = (gate * jax.nn.sigmoid(gate)) * up          # SiLU(gate) * up, f32
    o_ref[...] += jnp.dot(hidden.astype(wd_ref.dtype), wd_ref[...],
                          preferred_element_type=jnp.float32)


def _swiglu_kernel_scratch(x_ref, wgu_ref, wd_ref, o_ref, acc_ref, *, th):
    # non-f32 output: carry an f32 VMEM accumulator, cast once at the end.
    h = pl.program_id(1)

    @pl.when(h == 0)
    def _init():
        acc_ref[...] = jnp.zeros_like(acc_ref)

    x = x_ref[...]
    gu = jnp.dot(x, wgu_ref[...], preferred_element_type=jnp.float32)
    gate = gu[:, :th]
    up = gu[:, th:]
    hidden = (gate * jax.nn.sigmoid(gate)) * up
    acc_ref[...] += jnp.dot(hidden.astype(wd_ref.dtype), wd_ref[...],
                            preferred_element_type=jnp.float32)

    @pl.when(h == pl.num_programs(1) - 1)
    def _finalize():
        o_ref[...] = acc_ref[...].astype(o_ref.dtype)


# ----------------------------- wrapper ----------------------------------------

def swiglu_mlp(x, weights: SwiGLUWeights, *, tm=None, vmem_limit_bytes=None):
    """Fused SwiGLU MLP forward.  x: (B, T, C) -> (B, T, C)."""
    B, T, C = x.shape
    assert C == weights.C, f"x channel dim {C} != prepared weight C {weights.C}"
    M = B * T
    Cp, Hp, th = weights.Cp, weights.Hp, weights.th

    in_isz = jnp.dtype(x.dtype).itemsize
    w_isz = jnp.dtype(weights.wgu.dtype).itemsize
    out_dtype = x.dtype
    out_isz = jnp.dtype(out_dtype).itemsize
    use_scratch = jnp.dtype(out_dtype) != jnp.float32

    # Row tile: generation-aware default, clamped to the dtype's sublane packing.
    sub = max(8, 32 // in_isz)
    if tm is None:
        tm, _ = choose_tiles(M, C, weights.H, x.dtype)
    tm = max(sub, _round_up(min(tm, _round_up(M, sub)), sub))
    Mp = _round_up(M, tm)

    x2d = x.reshape(M, C)
    if (Mp, Cp) != (M, C):
        x2d = jnp.pad(x2d, ((0, Mp - M), (0, Cp - C)))

    # Explicit scoped-VMEM limit from the actual tile footprint (+ headroom),
    # never relying on the 16/32 MiB defaults.
    footprint = _vmem_footprint(tm, th, Cp, in_isz, w_isz, out_isz, use_scratch)
    if vmem_limit_bytes is None:
        cap = _vmem_capacity_bytes()
        vmem_limit_bytes = int(min(cap - (8 << 20),
                                   max(footprint + (8 << 20), 32 << 20)))

    grid = (Mp // tm, Hp // th)
    n_mtiles = grid[0]
    cost = pl.CostEstimate(
        flops=6 * Mp * Cp * Hp,               # 2 up-projections + 1 down-projection
        transcendentals=Mp * Hp,              # sigmoid exp per hidden element
        bytes_accessed=(in_isz * Mp * Cp                      # x read
                        + n_mtiles * 3 * Cp * Hp * w_isz      # weights per M tile
                        + out_isz * Mp * Cp),                 # output write
    )

    if use_scratch:
        kernel = functools.partial(_swiglu_kernel_scratch, th=th)
        scratch = [pltpu.VMEM((tm, Cp), jnp.float32)]
    else:
        kernel = functools.partial(_swiglu_kernel_f32out, th=th)
        scratch = []

    out2d = pl.pallas_call(
        kernel,
        out_shape=jax.ShapeDtypeStruct((Mp, Cp), out_dtype),
        grid_spec=pltpu.PrefetchScalarGridSpec(
            num_scalar_prefetch=0,
            grid=grid,
            in_specs=[
                pl.BlockSpec((tm, Cp), lambda i, h: (i, 0)),       # x row tile
                pl.BlockSpec((Cp, 2 * th), lambda i, h: (0, h)),   # fused gate|up tile
                pl.BlockSpec((th, Cp), lambda i, h: (h, 0)),       # down weight tile
            ],
            out_specs=pl.BlockSpec((tm, Cp), lambda i, h: (i, 0)),
            scratch_shapes=scratch,
        ),
        compiler_params=pltpu.CompilerParams(
            dimension_semantics=("parallel", "arbitrary"),
            vmem_limit_bytes=vmem_limit_bytes,
        ),
        cost_estimate=cost,
    )(x2d, weights.wgu, weights.wd)

    return out2d[:M, :C].reshape(B, T, C)


# ----------------------------- reference & test -------------------------------

def reference_swiglu(x, w_gate, w_up, w_down):
    gate = jax.nn.silu(jnp.einsum("btc,ch->bth", x, w_gate))
    up = jnp.einsum("btc,ch->bth", x, w_up)
    return jnp.einsum("bth,hc->btc", gate * up, w_down)


def _make_inputs(key, B, T, C, H):
    kx, kg, ku, kd = jax.random.split(key, 4)
    x = jax.random.normal(kx, (B, T, C), dtype=jnp.float32)
    s_in = 1.0 / (C ** 0.5)
    s_h = 1.0 / (H ** 0.5)
    w_gate = jax.random.uniform(kg, (C, H), jnp.float32, -s_in, s_in)
    w_up = jax.random.uniform(ku, (C, H), jnp.float32, -s_in, s_in)
    w_down = jax.random.uniform(kd, (H, C), jnp.float32, -s_h, s_h)
    return x, w_gate, w_up, w_down


if __name__ == "__main__":
    key = jax.random.PRNGKey(0)
    k1, k2 = jax.random.split(key)

    # --- test 1: module-consistent toy config (n_embd=48 -> hidden=128) ------
    n_embd = 48
    hidden_dim = int(8 * n_embd / 3)  # 128
    B, T = 2, 8
    x, wg, wu, wd = _make_inputs(k1, B, T, n_embd, hidden_dim)
    weights = swiglu_prepare(wg, wu, wd)          # one-time weight prep (pad + fuse)
    out = swiglu_mlp(x, weights)
    out = jax.block_until_ready(out)
    ref = reference_swiglu(x, wg, wu, wd)
    assert out.shape == (B, T, n_embd)
    assert jnp.allclose(out, ref, atol=1e-4, rtol=1e-4), "mismatch vs reference (test 1)"

    # --- test 2: exercises multi-step M tiling and the H-reduction path ------
    C2, H2, B2, T2 = 128, 256, 2, 64
    x2, wg2, wu2, wd2 = _make_inputs(k2, B2, T2, C2, H2)
    weights2 = swiglu_prepare(wg2, wu2, wd2, th=128)   # 2 H tiles
    out2 = swiglu_mlp(x2, weights2, tm=64)             # 2 M tiles
    out2 = jax.block_until_ready(out2)
    ref2 = reference_swiglu(x2, wg2, wu2, wd2)
    assert out2.shape == (B2, T2, C2)
    assert jnp.allclose(out2, ref2, atol=1e-3, rtol=1e-3), "mismatch vs reference (test 2)"

    print("KERNEL_OK")
</pallas_src>

<mosaic_0001>
module attributes {stable_mosaic.version = 11 : i64} {
  func.func @_swiglu_kernel_f32out(%arg0: i32, %arg1: i32, %arg2: memref<16x128xf32, #tpu.memory_space<vmem>>, %arg3: memref<128x256xf32, #tpu.memory_space<vmem>>, %arg4: memref<128x128xf32, #tpu.memory_space<vmem>>, %arg5: memref<16x128xf32, #tpu.memory_space<vmem>>) attributes {dimension_semantics = [#tpu.dimension_semantics<parallel>, #tpu.dimension_semantics<arbitrary>], iteration_bounds = array<i64: 1, 1>, scalar_prefetch = 0 : i64, scratch_operands = 0 : i64, tpu.core_type = #tpu.core_type<tc>, window_params = [{transform_indices = @transform_0, window_bounds = array<i64: 16, 128>}, {transform_indices = @transform_1, window_bounds = array<i64: 128, 256>}, {transform_indices = @transform_2, window_bounds = array<i64: 128, 128>}, {transform_indices = @transform_3, window_bounds = array<i64: 16, 128>}]} {
    %c0_i32 = arith.constant 0 : i32
    %0 = arith.cmpi eq, %arg1, %c0_i32 : i32
    %1 = arith.extui %0 : i1 to i32
    %c0_i32_0 = arith.constant 0 : i32
    %2 = arith.cmpi ne, %1, %c0_i32_0 : i32
    scf.if %2 {
      %cst_12 = arith.constant 0.000000e+00 : f32
      %20 = vector.broadcast %cst_12 : f32 to vector<16x128xf32>
      %c0_13 = arith.constant 0 : index
      %c0_14 = arith.constant 0 : index
      %21 = vector.load %arg5[%c0_13, %c0_14] : memref<16x128xf32, #tpu.memory_space<vmem>>, vector<16x128xf32>
      tpu.vector_store %arg5[%c0_13, %c0_14], %20 {strides = array<i32>} : memref<16x128xf32, #tpu.memory_space<vmem>>, vector<16x128xf32>,
    } else {
    }
    %c0 = arith.constant 0 : index
    %c0_1 = arith.constant 0 : index
    %3 = vector.load %arg2[%c0, %c0_1] : memref<16x128xf32, #tpu.memory_space<vmem>>, vector<16x128xf32>
    %c0_2 = arith.constant 0 : index
    %c0_3 = arith.constant 0 : index
    %4 = vector.load %arg3[%c0_2, %c0_3] : memref<128x256xf32, #tpu.memory_space<vmem>>, vector<128x256xf32>
    %cst = arith.constant dense<0.000000e+00> : vector<16x256xf32>
    %5 = tpu.matmul %3, %4, %cst {dimension_numbers = #tpu.dot_dimension_numbers<[1], [0], [0], [1], [0, 0, 1, 1], [], []>} : vector<16x128xf32>, vector<128x256xf32>, vector<16x256xf32> -> vector<16x256xf32>
    %6 = vector.extract_strided_slice %5 {offsets = [0, 0], sizes = [16, 128], strides = [1, 1]} : vector<16x256xf32> to vector<16x128xf32>
    %7 = vector.extract_strided_slice %5 {offsets = [0, 128], sizes = [16, 128], strides = [1, 1]} : vector<16x256xf32> to vector<16x128xf32>
    %8 = arith.negf %6 : vector<16x128xf32>
    %9 = math.exp %8 : vector<16x128xf32>
    %cst_4 = arith.constant 1.000000e+00 : f32
    %10 = vector.broadcast %cst_4 : f32 to vector<16x128xf32>
    %11 = arith.addf %10, %9 : vector<16x128xf32>
    %12 = arith.divf %10, %11 : vector<16x128xf32>
    %13 = arith.mulf %6, %12 : vector<16x128xf32>
    %14 = arith.mulf %13, %7 : vector<16x128xf32>
    %c0_5 = arith.constant 0 : index
    %c0_6 = arith.constant 0 : index
    %15 = vector.load %arg5[%c0_5, %c0_6] : memref<16x128xf32, #tpu.memory_space<vmem>>, vector<16x128xf32>
    %c0_7 = arith.constant 0 : index
    %c0_8 = arith.constant 0 : index
    %16 = vector.load %arg4[%c0_7, %c0_8] : memref<128x128xf32, #tpu.memory_space<vmem>>, vector<128x128xf32>
    %cst_9 = arith.constant dense<0.000000e+00> : vector<16x128xf32>
    %17 = tpu.matmul %14, %16, %cst_9 {dimension_numbers = #tpu.dot_dimension_numbers<[1], [0], [0], [1], [0, 0, 1, 1], [], []>} : vector<16x128xf32>, vector<128x128xf32>, vector<16x128xf32> -> vector<16x128xf32>
    %18 = arith.addf %15, %17 : vector<16x128xf32>
    %c0_10 = arith.constant 0 : index
    %c0_11 = arith.constant 0 : index
    %19 = vector.load %arg5[%c0_10, %c0_11] : memref<16x128xf32, #tpu.memory_space<vmem>>, vector<16x128xf32>
    tpu.vector_store %arg5[%c0_10, %c0_11], %18 {strides = array<i32>} : memref<16x128xf32, #tpu.memory_space<vmem>>, vector<16x128xf32>,
    return
  }
  func.func @transform_0(%arg0: i32, %arg1: i32) -> (i32, i32) {
    %c0_i32 = arith.constant 0 : i32
    %c0_i32_0 = arith.constant 0 : i32
    return %arg0, %c0_i32 : i32, i32
  }
  func.func @transform_1(%arg0: i32, %arg1: i32) -> (i32, i32) {
    %c0_i32 = arith.constant 0 : i32
    %c0_i32_0 = arith.constant 0 : i32
    return %c0_i32, %arg1 : i32, i32
  }
  func.func @transform_2(%arg0: i32, %arg1: i32) -> (i32, i32) {
    %c0_i32 = arith.constant 0 : i32
    %c0_i32_0 = arith.constant 0 : i32
    return %arg1, %c0_i32 : i32, i32
  }
  func.func @transform_3(%arg0: i32, %arg1: i32) -> (i32, i32) {
    %c0_i32 = arith.constant 0 : i32
    %c0_i32_0 = arith.constant 0 : i32
    return %arg0, %c0_i32 : i32, i32
  }
}

</mosaic_0001>

<bundles_post_ra>
// kernel: tpu_custom_call.1
= control target key start
LH: loop header
LB: loop body
LE: loop exit
PB: predicated region body
PF: predicated region fallthrough
CT: control target
= control target key end

     0   :  { %8 = vsyncpa [#allocation3], 0  ;;  %s514_s0 = inlined_call_operand.hbm [shape: f32[16,128], index: 0, kind: input, shape index: {}]   ;;  %s515_s1 = inlined_call_operand.hbm [shape: f32[128,256], index: 1, kind: input, shape index: {}]   ;;  %s516_s2 = inlined_call_operand.hbm [shape: f32[128,128], index: 2, kind: input, shape index: {}]   ;;  %s517_s3 = inlined_call_operand.hbm [shape: f32[16,128], index: 3, kind: output, shape index: {}]  }
   0x1   :  { %9 = vsyncpa [#allocation6], 0 }
   0x2   :  { %10 = vsyncpa [#allocation4], 0  ;;  %s462_s12 = smov [#allocation5]  }
   0x3   :  { %s28_s13 = sshll.u32 %s462_s12, 4  ;;  %s29_s13 = int_to_ptr.vmem [resolvable:$true] %s28_s13 }
   0x4   :  { %s384_s14 = scalar_lea.vmem %s29_s13, 4096  ;;  %p389_p1 = scmp.lt.s32.totalorder %s29_s13, %s29_s13 }
   0x5   :  { %p385_p0 = scmp.ne.s32.totalorder %s29_s13, %s384_s14  ;;  %p390_p2 = scmp.lt.s32.totalorder %s384_s14, %s384_s14 }
   0x7   :  { %p391_p3 = por %p390_p2, %p389_p1 }
   0x9   :  { %p392_p4 = pnand %p391_p3, %p385_p0 }
   0xb   :  { %395 = shalt.err (!%p392_p4)
}
   0xc   :  { %s463_s15 = smov 256   ;;  %s464_s16 = smov 16  }
   0xd   :  { %34 = dma.hbm_to_vmem [thread:$0]  %s515_s1, 4096, %s29_s13, [#allocation6], %s463_s15, %s463_s15, %s464_s16  }
   0xe   :  { %s465_s19 = smov [#allocation2]  }
   0xf   :  { %s16_s20 = sshll.u32 %s465_s19, 4  ;;  %s17_s20 = int_to_ptr.vmem [resolvable:$true] %s16_s20 }
  0x10   :  { %s404_s21 = scalar_lea.vmem %s17_s20, 256  ;;  %p409_p6 = scmp.lt.s32.totalorder %s17_s20, %s17_s20 }
  0x11   :  { %p405_p5 = scmp.ne.s32.totalorder %s17_s20, %s404_s21  ;;  %p410_p7 = scmp.lt.s32.totalorder %s404_s21, %s404_s21 }
  0x13   :  { %p411_p8 = por %p410_p7, %p409_p6 }
  0x15   :  { %p412_p9 = pnand %p411_p8, %p405_p5 }
  0x17   :  { %415 = shalt.err (!%p412_p9)
}
  0x18   :  { %s466_s22 = smov 128   ;;  %s467_s23 = smov 8  }
  0x19   :  { %22 = dma.hbm_to_vmem [thread:$0]  %s514_s0, 256, %s17_s20, [#allocation3], %s466_s22, %s466_s22, %s467_s23  }
  0x1a   :  { %s468_s1 = smov [#allocation7]  }
  0x1b   :  { %s40_s26 = sshll.u32 %s468_s1, 4  ;;  %s41_s26 = int_to_ptr.vmem [resolvable:$true] %s40_s26 }
  0x1c   :  { %s424_s27 = scalar_lea.vmem %s41_s26, 2048  ;;  %p429_p11 = scmp.lt.s32.totalorder %s41_s26, %s41_s26 }
  0x1d   :  { %p425_p10 = scmp.ne.s32.totalorder %s41_s26, %s424_s27  ;;  %p430_p12 = scmp.lt.s32.totalorder %s424_s27, %s424_s27 }
  0x1f   :  { %p431_p13 = por %p430_p12, %p429_p11 }
  0x21   :  { %p432_p0 = pnand %p431_p13, %p425_p10 }
  0x23   :  { %435 = shalt.err (!%p432_p0)
}
  0x24   :  { %46 = dma.hbm_to_vmem [thread:$0]  %s516_s2, 2048, %s41_s26, [#allocation6], %s466_s22, %s466_s22, %s467_s23  }
  0x25   :  { %456 = dma.done.wait [#allocation3], 256  }
  0x26   :  { %457 = vsyncadd [#allocation3], 4294967040 }
  0x27   :  { %458 = dma.done.wait [#allocation6], 6144  }
  0x28   :  { %459 = vsyncadd [#allocation6], 4294961152  ;;  %v469_v0 = vmov 0.0   ;;  %v95_v1 = vld [vmem:[#allocation5 + $0xf8] sm:$0xff]  ;;  %v94_v2 = vld [vmem:[#allocation5 + $0xf0] sm:$0xff]  ;;  %s470_s0 = smov [#allocation8]  }
  0x29   :  { %160 = vmatprep.mubr.f32.mxu0 %v469_v0  ;;  %v93_v3 = vld [vmem:[#allocation5 + $0xe8] sm:$0xff]  ;;  %96 = vmatprep.subr.mxu0 %v95_v1  ;;  %v92_v4 = vld [vmem:[#allocation5 + $0xe0] sm:$0xff]  ;;  %v91_v5 = vld [vmem:[#allocation5 + $0xd8] sm:$0xff]  ;;  %s291_s2 = sshll.u32 %s470_s0, 4  ;;  %s292_s2 = int_to_ptr.vmem [resolvable:$true] %s291_s2 }
  0x2a   :  { %97 = vmatpush1.msra.mxu0 %v94_v2  ;;  %v90_v6 = vld [vmem:[#allocation5 + $0xd0] sm:$0xff]  ;;  %v89_v7 = vld [vmem:[#allocation5 + $0xc8] sm:$0xff]  ;;  %v88_v8 = vld [vmem:[#allocation5 + $0xc0] sm:$0xff]  ;;  %s436_s30 = scalar_lea.vmem %s292_s2, 256  ;;  %p441_p2 = scmp.lt.s32.totalorder %s292_s2, %s292_s2 }
  0x2b   :  { %98 = vmatprep.subr.mxu0 %v93_v3  ;;  %v87_v9 = vld [vmem:[#allocation5 + $0xb8] sm:$0xff]  ;;  %v86_v10 = vld [vmem:[#allocation5 + $0xb0] sm:$0xff]  ;;  %v85_v11 = vld [vmem:[#allocation5 + $0xa8] sm:$0xff]  ;;  %p437_p1 = scmp.ne.s32.totalorder %s292_s2, %s436_s30  ;;  %p442_p3 = scmp.lt.s32.totalorder %s436_s30, %s436_s30 }
  0x2c   :  { %99 = vmatpush1.msra.mxu0 %v92_v4  ;;  %v84_v12 = vld [vmem:[#allocation5 + $0xa0] sm:$0xff]  ;;  %v83_v13 = vld [vmem:[#allocation5 + $0x98] sm:$0xff]  ;;  %v82_v14 = vld [vmem:[#allocation5 + $0x90] sm:$0xff] }
  0x2d   :  { %100 = vmatprep.subr.mxu0 %v91_v5  ;;  %v81_v15 = vld [vmem:[#allocation5 + $0x88] sm:$0xff]  ;;  %v80_v16 = vld [vmem:[#allocation5 + $0x80] sm:$0xff]  ;;  %v79_v17 = vld [vmem:[#allocation5 + $0x78] sm:$0xff]  ;;  %p443_p4 = por %p442_p3, %p441_p2 }
  0x2e   :  { %101 = vmatpush1.msra.mxu0 %v90_v6  ;;  %v78_v18 = vld [vmem:[#allocation5 + $0x70] sm:$0xff]  ;;  %v77_v19 = vld [vmem:[#allocation5 + $0x68] sm:$0xff]  ;;  %v76_v20 = vld [vmem:[#allocation5 + $0x60] sm:$0xff] }
  0x2f   :  { %102 = vmatprep.subr.mxu0 %v89_v7  ;;  %v75_v21 = vld [vmem:[#allocation5 + $0x58] sm:$0xff]  ;;  %v74_v22 = vld [vmem:[#allocation5 + $0x50] sm:$0xff]  ;;  %v73_v23 = vld [vmem:[#allocation5 + $0x48] sm:$0xff]  ;;  %p444_p5 = pnand %p443_p4, %p437_p1 }
  0x30   :  { %103 = vmatpush1.msra.mxu0 %v88_v8  ;;  %v72_v24 = vld [vmem:[#allocation5 + $0x40] sm:$0xff]  ;;  %v71_v25 = vld [vmem:[#allocation5 + $0x38] sm:$0xff]  ;;  %v70_v26 = vld [vmem:[#allocation5 + $0x30] sm:$0xff] }
  0x31   :  { %104 = vmatprep.subr.mxu0 %v87_v9  ;;  %v69_v27 = vld [vmem:[#allocation5 + $0x28] sm:$0xff]  ;;  %v68_v28 = vld [vmem:[#allocation5 + $0x20] sm:$0xff]  ;;  %v67_v29 = vld [vmem:[#allocation5 + $0x18] sm:$0xff] }
  0x32   :  { %105 = vmatpush1.msra.mxu0 %v86_v10  ;;  %v66_v30 = vld [vmem:[#allocation5 + $0x10] sm:$0xff]  ;;  %v65_v31 = vld [vmem:[#allocation5 + $0x8] sm:$0xff]  ;;  %v64_v32 = vld [vmem:[#allocation5] sm:$0xff] }
  0x33   :  { %106 = vmatprep.subr.mxu0 %v85_v11  ;;  %v62_v33 = vld [vmem:[#allocation2] sm:$0xff]  ;;  %v63_v34 = vld [vmem:[#allocation2 + $0x8] sm:$0xff]  ;;  %v204_v37 = vld [vmem:[#allocation7 + $0x68] sm:$0xff] }
  0x34   :  { %107 = vmatpush1.msra.mxu0 %v84_v12  ;;  %v206_v35 = vld [vmem:[#allocation7 + $0x78] sm:$0xff]  ;;  %v205_v36 = vld [vmem:[#allocation7 + $0x70] sm:$0xff]  ;;  %v203_v38 = vld [vmem:[#allocation7 + $0x60] sm:$0xff] }
  0x35   :  { %108 = vmatprep.subr.mxu0 %v83_v13  ;;  %324 = vmatprep.subr.mxu1 %v206_v35  ;;  %v202_v39 = vld [vmem:[#allocation7 + $0x58] sm:$0xff]  ;;  %v201_v40 = vld [vmem:[#allocation7 + $0x50] sm:$0xff]  ;;  %v200_v41 = vld [vmem:[#allocation7 + $0x48] sm:$0xff] }
  0x36   :  { %109 = vmatpush1.msra.mxu0 %v82_v14  ;;  %325 = vmatpush3.msra.mxu1 %v206_v35  ;;  %v199_v42 = vld [vmem:[#allocation7 + $0x40] sm:$0xff]  ;;  %v198_v43 = vld [vmem:[#allocation7 + $0x38] sm:$0xff]  ;;  %v197_v44 = vld [vmem:[#allocation7 + $0x30] sm:$0xff] }
  0x37   :  { %110 = vmatprep.subr.mxu0 %v81_v15  ;;  %326 = vmatprep.subr.mxu1 %v205_v36  ;;  %v196_v45 = vld [vmem:[#allocation7 + $0x28] sm:$0xff]  ;;  %v195_v46 = vld [vmem:[#allocation7 + $0x20] sm:$0xff]  ;;  %v194_v47 = vld [vmem:[#allocation7 + $0x18] sm:$0xff] }
  0x38   :  { %111 = vmatpush1.msra.mxu0 %v80_v16  ;;  %327 = vmatpush3.msra.mxu1 %v205_v36  ;;  %v193_v48 = vld [vmem:[#allocation7 + $0x10] sm:$0xff]  ;;  %v192_v49 = vld [vmem:[#allocation7 + $0x8] sm:$0xff]  ;;  %v191_v50 = vld [vmem:[#allocation7] sm:$0xff] }
  0x39   :  { %112 = vmatprep.subr.mxu0 %v79_v17  ;;  %328 = vmatprep.subr.mxu1 %v204_v37 }
  0x3a   :  { %113 = vmatpush1.msra.mxu0 %v78_v18  ;;  %329 = vmatpush3.msra.mxu1 %v204_v37 }
  0x3b   :  { %114 = vmatprep.subr.mxu0 %v77_v19  ;;  %330 = vmatprep.subr.mxu1 %v203_v38 }
  0x3c   :  { %115 = vmatpush1.msra.mxu0 %v76_v20  ;;  %331 = vmatpush3.msra.mxu1 %v203_v38 }
  0x3d   :  { %116 = vmatprep.subr.mxu0 %v75_v21  ;;  %332 = vmatprep.subr.mxu1 %v202_v39 }
  0x3e   :  { %117 = vmatpush1.msra.mxu0 %v74_v22  ;;  %333 = vmatpush3.msra.mxu1 %v202_v39 }
  0x3f   :  { %118 = vmatprep.subr.mxu0 %v73_v23  ;;  %334 = vmatprep.subr.mxu1 %v201_v40 }
  0x40   :  { %119 = vmatpush1.msra.mxu0 %v72_v24  ;;  %335 = vmatpush3.msra.mxu1 %v201_v40 }
  0x41   :  { %120 = vmatprep.subr.mxu0 %v71_v25  ;;  %336 = vmatprep.subr.mxu1 %v200_v41 }
  0x42   :  { %121 = vmatpush1.msra.mxu0 %v70_v26  ;;  %337 = vmatpush3.msra.mxu1 %v200_v41 }
  0x43   :  { %122 = vmatprep.subr.mxu0 %v69_v27  ;;  %338 = vmatprep.subr.mxu1 %v199_v42 }
  0x44   :  { %123 = vmatpush1.msra.mxu0 %v68_v28  ;;  %339 = vmatpush3.msra.mxu1 %v199_v42 }
  0x45   :  { %124 = vmatprep.subr.mxu0 %v67_v29  ;;  %340 = vmatprep.subr.mxu1 %v198_v43 }
  0x46   :  { %125 = vmatpush1.msra.mxu0 %v66_v30  ;;  %341 = vmatpush3.msra.mxu1 %v198_v43 }
  0x47   :  { %126 = vmatprep.subr.mxu0 %v65_v31  ;;  %342 = vmatprep.subr.mxu1 %v197_v44 }
  0x48   :  { %127 = vmatpush1.msra.mxu0 %v64_v32  ;;  %343 = vmatpush3.msra.mxu1 %v197_v44 }
  0x49   :  { %161 = vmatmul.mubr.f32.vlgmr.msra.gmra.mxu0 %v62_v33  ;;  %344 = vmatprep.subr.mxu1 %v196_v45 }
  0x4a   :  { %166 = vmatprep.mubr.f32.mxu0 %v469_v0  ;;  %345 = vmatpush3.msra.mxu1 %v196_v45 }
  0x4b   :  { %346 = vmatprep.subr.mxu1 %v195_v46 }
  0x4c   :  { %347 = vmatpush3.msra.mxu1 %v195_v46 }
  0x4d   :  { %167 = vmatmul.mubr.f32.gmra.mxu0 %v63_v34  ;;  %348 = vmatprep.subr.mxu1 %v194_v47 }
  0x4e   :  { %349 = vmatpush3.msra.mxu1 %v194_v47 }
  0x4f   :  { %350 = vmatprep.subr.mxu1 %v193_v48 }
  0x50   :  { %351 = vmatpush3.msra.mxu1 %v193_v48 }
  0x51   :  { %352 = vmatprep.subr.mxu1 %v192_v49 }
  0x52   :  { %353 = vmatpush3.msra.mxu1 %v192_v49 }
  0x53   :  { %354 = vmatprep.subr.mxu1 %v191_v50 }
  0x54   :  { %355 = vmatpush3.msra.mxu1 %v191_v50 }
 0x109   :  { %v162_v51 = vpop.f32.mrf.mxu0 }
 0x10a   :  { %v304_v52 = vmul.f32 -1.442695, %v162_v51 }
 0x10b   :  { %v164_v53 = vpop.f32.mrf.mxu0 }
 0x10c   :  { %368 = vpow2.f32 %v304_v52 }
 0x10d   :  { %v168_v54 = vpop.f32.mrf.mxu0 }
 0x10e   :  { %v305_v55 = vmul.f32 -1.442695, %v168_v54 }
 0x10f   :  { %v170_v1 = vpop.f32.mrf.mxu0 }
 0x110   :  { %370 = vpow2.f32 %v305_v55 }
 0x119   :  { %v369_v56 = vpop.eup %368 }
 0x11a   :  { %v179_v57 = vadd.f32 1.0, %v369_v56 }
 0x11c   :  { %372 = vrcp.f32 %v179_v57 }
 0x11d   :  { %v371_v58 = vpop.eup %370 }
 0x11e   :  { %v180_v59 = vadd.f32 1.0, %v371_v58 }
 0x120   :  { %374 = vrcp.f32 %v180_v59 }
 0x129   :  { %v373_v60 = vpop.eup %372 }
 0x12a   :  { %v185_v61 = vmul.f32 %v373_v60, %v162_v51 }
 0x12c   :  { %v187_v62 = vmul.f32 %v185_v61, %v164_v53 }
 0x12d   :  { %v375_v63 = vpop.eup %374 }
 0x12e   :  { %v186_v0 = vmul.f32 %v375_v63, %v168_v54  ;;  %356 = vmatprep.mubr.f32.mxu1 %v187_v62 }
 0x130   :  { %v188_v2 = vmul.f32 %v186_v0, %v170_v1 }
 0x132   :  { %357 = vmatmul.mubr.f32.vlgmr.msra.gmra.mxu1 %v188_v2 }
 0x1f2   :  { %v358_v3 = vpop.f32.mrf.mxu1 }
 0x1f3   :  { %285 = vst [vmem:[#allocation8 + $0x8] sm:$0xff] %v358_v3 }
 0x1f4   :  { %v273_v4 = vpop.f32.mrf.mxu1 }
 0x1f5   :  { %284 = vst [vmem:[#allocation8] sm:$0xff] %v273_v4 }
 0x1f6   :  { %447 = shalt.err (!%p444_p5)
}
 0x1f7   :  { %297 = dma.vmem_to_hbm [thread:$0]  %s292_s2, 256, %s517_s3, [#allocation4], %s466_s22, %s466_s22, %s467_s23  }
 0x1f8   :  { %460 = dma.done.wait [#allocation4], 256  }
 0x1f9   :  { %461 = vsyncadd [#allocation4], 4294967040 }
 0x1fa   :  { %301 = vsyncpa [#allocation3], 1 }
 0x1fb   :  { %302 = vsyncpa [#allocation6], 1 }
 0x1fc   :  { %303 = vsyncpa [#allocation4], 1 }

</bundles_post_ra>
